<compile_context>
chip_gen: v6e
topology: v6e:2x2x1
jax: 0.10.0
libtpu: 0.0.40
codegen_flags: <defaults>
</compile_context>

<pallas_src>
import math
import functools

import jax
import jax.numpy as jnp
from jax import lax
from jax.experimental import pallas as pl
from jax.experimental.pallas import tpu as pltpu


def _embedding_hbm_kernel(idx_ref, table_ref, out_ref, copy_sem, *,
                          scale, token_block, vocab):
    """Gather token_block rows from the HBM table straight into out_ref.

    idx_ref   : SMEM scalar-prefetch ref, flattened token ids, shape (n_pad,)
    table_ref : HBM ref (memory_space=ANY), shape (vocab, d_pad)
    out_ref   : VMEM output tile, shape (token_block, d_pad)
    copy_sem  : single DMA semaphore shared by all row copies of this tile
    """
    base = pl.program_id(0) * token_block

    # Issue all row DMAs for this tile (HBM -> VMEM gather, overlapping on the
    # DMA engines). Unrolled so address math co-issues with descriptor pushes.
    def issue(t, carry):
        row = idx_ref[base + t]
        pltpu.make_async_copy(
            table_ref.at[pl.ds(row, 1), :],
            out_ref.at[pl.ds(t, 1), :],
            copy_sem,
        ).start()
        return carry

    lax.fori_loop(0, token_block, issue, 0, unroll=8)

    # ONE wait whose descriptor covers the whole tile: DMA semaphores count
    # bytes, and token_block copies of (1, d_pad) == one (token_block, d_pad).
    if token_block <= vocab:
        wait_src = table_ref.at[pl.ds(0, token_block), :]   # shape-only
    else:
        wait_src = out_ref
    pltpu.make_async_copy(wait_src, out_ref, copy_sem).wait()

    # One vectorized in-place scale on the whole (lane-dense) tile.
    out_ref[...] = (out_ref[...] * scale).astype(out_ref.dtype)


def _embedding_vmem_kernel(idx_ref, table_ref, out_ref, *, scale, token_block):
    """Small-table fast path: table is VMEM-resident, gather with row reads."""
    base = pl.program_id(0) * token_block

    def gather(t, carry):
        row = idx_ref[base + t]
        out_ref[pl.ds(t, 1), :] = table_ref[pl.ds(row, 1), :]
        return carry

    lax.fori_loop(0, token_block, gather, 0, unroll=8)
    out_ref[...] = (out_ref[...] * scale).astype(out_ref.dtype)


def embedding_forward(x, table, *, token_block=256,
                      table_vmem_bytes_limit=4 * 1024 * 1024):
    """x: (batch, seq) int ids; table: (vocab, d_model).

    Returns table[x] * sqrt(d_model) with shape (batch, seq, d_model).
    Out-of-range ids are clamped to [0, vocab-1] (PyTorch would raise).
    """
    batch, seq = x.shape
    vocab, d_model = table.shape
    scale = float(math.sqrt(d_model))
    itemsize = jnp.dtype(table.dtype).itemsize

    # Lane-dense output: pad d_model up to a multiple of 128.  This branch is
    # only taken when d_model % 128 != 0; for repeated production calls the
    # weight should be padded once at init instead (it rewrites the table).
    d_pad = pl.cdiv(d_model, 128) * 128
    if d_pad != d_model:
        # TODO(synk): hoist this pad to parameter-init time for repeated calls.
        table = jnp.pad(table, ((0, 0), (0, d_pad - d_model)))

    n_tokens = batch * seq

    # token_block: multiple of 8, big enough to amortize ~0.35us/step pipeline
    # overhead, capped so the double-buffered output tile stays <= ~16 MiB
    # (well inside scoped VMEM on v5e/v6e/v7x).
    max_tb = max(8, ((16 << 20) // (2 * d_pad * itemsize)) // 8 * 8)
    token_block = min(token_block, max_tb, pl.cdiv(n_tokens, 8) * 8)
    if pl.cdiv(n_tokens, token_block) < 2 and n_tokens >= 16:
        # Keep >= 2 grid steps so both v7x TensorCores get tiles.
        token_block = pl.cdiv(pl.cdiv(n_tokens, 2), 8) * 8
    token_block = max(8, token_block)
    n_pad = pl.cdiv(n_tokens, token_block) * token_block
    grid = (n_pad // token_block,)

    # Flatten ids, clamp (guards the HBM row DMA against OOB faults), pad the
    # tail with id 0 so padded slots gather a valid row (sliced off later).
    idx_flat = jnp.zeros((n_pad,), dtype=jnp.int32).at[:n_tokens].set(
        jnp.clip(x.reshape(-1).astype(jnp.int32), 0, vocab - 1))

    out_bytes = 2 * token_block * d_pad * itemsize        # out double-buffer
    cost = pl.CostEstimate(
        flops=n_pad * d_pad,
        transcendentals=0,
        bytes_accessed=2 * n_pad * d_pad * itemsize + n_pad * 4,
    )
    out_spec = pl.BlockSpec((token_block, d_pad), lambda i, idx: (i, 0))

    table_bytes = vocab * d_pad * itemsize
    if table_bytes <= table_vmem_bytes_limit:
        # Fast path: VMEM-resident table (constant index_map -> fetched once).
        kernel = functools.partial(_embedding_vmem_kernel, scale=scale,
                                   token_block=token_block)
        in_specs = [pl.BlockSpec((vocab, d_pad), lambda i, idx: (0, 0))]
        scratch_shapes = []
        vmem_need = 2 * table_bytes + out_bytes
    else:
        # Large-table path: HBM-resident table, per-row DMA gather.
        kernel = functools.partial(_embedding_hbm_kernel, scale=scale,
                                   token_block=token_block, vocab=vocab)
        in_specs = [pl.BlockSpec(memory_space=pl.ANY)]
        scratch_shapes = [pltpu.SemaphoreType.DMA(())]
        vmem_need = out_bytes

    vmem_limit = int(min(64 << 20, max(vmem_need + (4 << 20), 32 << 20)))

    out_flat = pl.pallas_call(
        kernel,
        out_shape=jax.ShapeDtypeStruct((n_pad, d_pad), table.dtype),
        grid_spec=pltpu.PrefetchScalarGridSpec(
            num_scalar_prefetch=1,                 # idx_flat -> SMEM
            grid=grid,
            in_specs=in_specs,
            out_specs=out_spec,
            scratch_shapes=scratch_shapes,
        ),
        compiler_params=pltpu.CompilerParams(
            dimension_semantics=("parallel",),
            vmem_limit_bytes=vmem_limit,
        ),
        cost_estimate=cost,
    )(idx_flat, table)

    return out_flat[:n_tokens, :d_model].reshape(batch, seq, d_model)


if __name__ == "__main__":
    key = jax.random.PRNGKey(0)
    k_idx, k_tab = jax.random.split(key)

    batch, seq = 2, 8
    vocab, d_model = 64, 32

    # Deterministic synthetic parameters: nn.Embedding default init is N(0, 1).
    table = jax.random.normal(k_tab, (vocab, d_model), dtype=jnp.float32)
    x = jax.random.randint(k_idx, (batch, seq), 0, vocab, dtype=jnp.int32)

    # Reference: plain-JAX gather + scale.
    ref = jnp.take(table, x.reshape(-1), axis=0).reshape(
        batch, seq, d_model) * math.sqrt(d_model)

    # 1) Small-table fast path (VMEM-resident table).
    out_fast = jax.block_until_ready(embedding_forward(x, table))
    assert out_fast.shape == (batch, seq, d_model)
    assert out_fast.dtype == jnp.float32
    assert jnp.allclose(out_fast, ref, atol=1e-6, rtol=1e-6)

    # 2) Large-table path (forced): HBM-resident table, per-row DMA gather.
    out_hbm = jax.block_until_ready(
        embedding_forward(x, table, table_vmem_bytes_limit=0))
    assert out_hbm.shape == (batch, seq, d_model)
    assert jnp.allclose(out_hbm, ref, atol=1e-6, rtol=1e-6)

    print("KERNEL_OK")
</pallas_src>

<mosaic_0001>
module attributes {stable_mosaic.version = 11 : i64} {
  func.func @_embedding_vmem_kernel(%arg0: i32, %arg1: memref<16xi32, #tpu.memory_space<smem>>, %arg2: memref<64x128xf32, #tpu.memory_space<vmem>>, %arg3: memref<8x128xf32, #tpu.memory_space<vmem>>) attributes {dimension_semantics = [#tpu.dimension_semantics<parallel>], iteration_bounds = array<i64: 2>, scalar_prefetch = 1 : i64, scratch_operands = 0 : i64, tpu.core_type = #tpu.core_type<tc>, window_params = [{pipeline_mode = #tpu.pipeline_mode<synchronous>, transform_indices = @transform_0, window_bounds = array<i64: 64, 128>}, {transform_indices = @transform_1, window_bounds = array<i64: 8, 128>}]} {
    %c8_i32 = arith.constant 8 : i32
    %0 = arith.muli %arg0, %c8_i32 : i32
    %c0_i32 = arith.constant 0 : i32
    %1 = arith.addi %0, %c0_i32 : i32
    %2 = arith.index_cast %1 : i32 to index
    %3 = memref.load %arg1[%2] : memref<16xi32, #tpu.memory_space<smem>>
    %4 = arith.index_cast %3 : i32 to index
    %c0 = arith.constant 0 : index
    %5 = vector.load %arg2[%4, %c0] : memref<64x128xf32, #tpu.memory_space<vmem>>, vector<1x128xf32>
    %6 = arith.index_cast %c0_i32 : i32 to index
    %c0_0 = arith.constant 0 : index
    %7 = vector.load %arg3[%6, %c0_0] : memref<8x128xf32, #tpu.memory_space<vmem>>, vector<1x128xf32>
    tpu.vector_store %arg3[%6, %c0_0], %5 {strides = array<i32>} : memref<8x128xf32, #tpu.memory_space<vmem>>, vector<1x128xf32>,
    %c1_i32 = arith.constant 1 : i32
    %8 = arith.addi %0, %c1_i32 : i32
    %9 = arith.index_cast %8 : i32 to index
    %10 = memref.load %arg1[%9] : memref<16xi32, #tpu.memory_space<smem>>
    %11 = arith.index_cast %10 : i32 to index
    %c0_1 = arith.constant 0 : index
    %12 = vector.load %arg2[%11, %c0_1] : memref<64x128xf32, #tpu.memory_space<vmem>>, vector<1x128xf32>
    %13 = arith.index_cast %c1_i32 : i32 to index
    %c0_2 = arith.constant 0 : index
    %14 = vector.load %arg3[%13, %c0_2] : memref<8x128xf32, #tpu.memory_space<vmem>>, vector<1x128xf32>
    tpu.vector_store %arg3[%13, %c0_2], %12 {strides = array<i32>} : memref<8x128xf32, #tpu.memory_space<vmem>>, vector<1x128xf32>,
    %c2_i32 = arith.constant 2 : i32
    %15 = arith.addi %0, %c2_i32 : i32
    %16 = arith.index_cast %15 : i32 to index
    %17 = memref.load %arg1[%16] : memref<16xi32, #tpu.memory_space<smem>>
    %18 = arith.index_cast %17 : i32 to index
    %c0_3 = arith.constant 0 : index
    %19 = vector.load %arg2[%18, %c0_3] : memref<64x128xf32, #tpu.memory_space<vmem>>, vector<1x128xf32>
    %20 = arith.index_cast %c2_i32 : i32 to index
    %c0_4 = arith.constant 0 : index
    %21 = vector.load %arg3[%20, %c0_4] : memref<8x128xf32, #tpu.memory_space<vmem>>, vector<1x128xf32>
    tpu.vector_store %arg3[%20, %c0_4], %19 {strides = array<i32>} : memref<8x128xf32, #tpu.memory_space<vmem>>, vector<1x128xf32>,
    %c3_i32 = arith.constant 3 : i32
    %22 = arith.addi %0, %c3_i32 : i32
    %23 = arith.index_cast %22 : i32 to index
    %24 = memref.load %arg1[%23] : memref<16xi32, #tpu.memory_space<smem>>
    %25 = arith.index_cast %24 : i32 to index
    %c0_5 = arith.constant 0 : index
    %26 = vector.load %arg2[%25, %c0_5] : memref<64x128xf32, #tpu.memory_space<vmem>>, vector<1x128xf32>
    %27 = arith.index_cast %c3_i32 : i32 to index
    %c0_6 = arith.constant 0 : index
    %28 = vector.load %arg3[%27, %c0_6] : memref<8x128xf32, #tpu.memory_space<vmem>>, vector<1x128xf32>
    tpu.vector_store %arg3[%27, %c0_6], %26 {strides = array<i32>} : memref<8x128xf32, #tpu.memory_space<vmem>>, vector<1x128xf32>,
    %c4_i32 = arith.constant 4 : i32
    %29 = arith.addi %0, %c4_i32 : i32
    %30 = arith.index_cast %29 : i32 to index
    %31 = memref.load %arg1[%30] : memref<16xi32, #tpu.memory_space<smem>>
    %32 = arith.index_cast %31 : i32 to index
    %c0_7 = arith.constant 0 : index
    %33 = vector.load %arg2[%32, %c0_7] : memref<64x128xf32, #tpu.memory_space<vmem>>, vector<1x128xf32>
    %34 = arith.index_cast %c4_i32 : i32 to index
    %c0_8 = arith.constant 0 : index
    %35 = vector.load %arg3[%34, %c0_8] : memref<8x128xf32, #tpu.memory_space<vmem>>, vector<1x128xf32>
    tpu.vector_store %arg3[%34, %c0_8], %33 {strides = array<i32>} : memref<8x128xf32, #tpu.memory_space<vmem>>, vector<1x128xf32>,
    %c5_i32 = arith.constant 5 : i32
    %36 = arith.addi %0, %c5_i32 : i32
    %37 = arith.index_cast %36 : i32 to index
    %38 = memref.load %arg1[%37] : memref<16xi32, #tpu.memory_space<smem>>
    %39 = arith.index_cast %38 : i32 to index
    %c0_9 = arith.constant 0 : index
    %40 = vector.load %arg2[%39, %c0_9] : memref<64x128xf32, #tpu.memory_space<vmem>>, vector<1x128xf32>
    %41 = arith.index_cast %c5_i32 : i32 to index
    %c0_10 = arith.constant 0 : index
    %42 = vector.load %arg3[%41, %c0_10] : memref<8x128xf32, #tpu.memory_space<vmem>>, vector<1x128xf32>
    tpu.vector_store %arg3[%41, %c0_10], %40 {strides = array<i32>} : memref<8x128xf32, #tpu.memory_space<vmem>>, vector<1x128xf32>,
    %c6_i32 = arith.constant 6 : i32
    %43 = arith.addi %0, %c6_i32 : i32
    %44 = arith.index_cast %43 : i32 to index
    %45 = memref.load %arg1[%44] : memref<16xi32, #tpu.memory_space<smem>>
    %46 = arith.index_cast %45 : i32 to index
    %c0_11 = arith.constant 0 : index
    %47 = vector.load %arg2[%46, %c0_11] : memref<64x128xf32, #tpu.memory_space<vmem>>, vector<1x128xf32>
    %48 = arith.index_cast %c6_i32 : i32 to index
    %c0_12 = arith.constant 0 : index
    %49 = vector.load %arg3[%48, %c0_12] : memref<8x128xf32, #tpu.memory_space<vmem>>, vector<1x128xf32>
    tpu.vector_store %arg3[%48, %c0_12], %47 {strides = array<i32>} : memref<8x128xf32, #tpu.memory_space<vmem>>, vector<1x128xf32>,
    %c7_i32 = arith.constant 7 : i32
    %50 = arith.addi %0, %c7_i32 : i32
    %51 = arith.index_cast %50 : i32 to index
    %52 = memref.load %arg1[%51] : memref<16xi32, #tpu.memory_space<smem>>
    %53 = arith.index_cast %52 : i32 to index
    %c0_13 = arith.constant 0 : index
    %54 = vector.load %arg2[%53, %c0_13] : memref<64x128xf32, #tpu.memory_space<vmem>>, vector<1x128xf32>
    %55 = arith.index_cast %c7_i32 : i32 to index
    %c0_14 = arith.constant 0 : index
    %56 = vector.load %arg3[%55, %c0_14] : memref<8x128xf32, #tpu.memory_space<vmem>>, vector<1x128xf32>
    tpu.vector_store %arg3[%55, %c0_14], %54 {strides = array<i32>} : memref<8x128xf32, #tpu.memory_space<vmem>>, vector<1x128xf32>,
    %c8_i32_15 = arith.constant 8 : i32
    %c0_16 = arith.constant 0 : index
    %c0_17 = arith.constant 0 : index
    %57 = vector.load %arg3[%c0_16, %c0_17] : memref<8x128xf32, #tpu.memory_space<vmem>>, vector<8x128xf32>
    %cst = arith.constant 5.65685415 : f32
    %58 = vector.broadcast %cst : f32 to vector<8x128xf32>
    %59 = arith.mulf %57, %58 : vector<8x128xf32>
    %c0_18 = arith.constant 0 : index
    %c0_19 = arith.constant 0 : index
    %60 = vector.load %arg3[%c0_18, %c0_19] : memref<8x128xf32, #tpu.memory_space<vmem>>, vector<8x128xf32>
    tpu.vector_store %arg3[%c0_18, %c0_19], %59 {strides = array<i32>} : memref<8x128xf32, #tpu.memory_space<vmem>>, vector<8x128xf32>,
    return
  }
  func.func @transform_0(%arg0: i32, %arg1: memref<16xi32, #tpu.memory_space<smem>>) -> (i32, i32) {
    %c0_i32 = arith.constant 0 : i32
    %c0_i32_0 = arith.constant 0 : i32
    %c0_i32_1 = arith.constant 0 : i32
    return %c0_i32, %c0_i32_0 : i32, i32
  }
  func.func @transform_1(%arg0: i32, %arg1: memref<16xi32, #tpu.memory_space<smem>>) -> (i32, i32) {
    %c0_i32 = arith.constant 0 : i32
    %c0_i32_0 = arith.constant 0 : i32
    return %arg0, %c0_i32 : i32, i32
  }
}

</mosaic_0001>

<bundles_post_ra>
// kernel: tpu_custom_call.1
= control target key start
LH: loop header
LB: loop body
LE: loop exit
PB: predicated region body
PF: predicated region fallthrough
CT: control target
= control target key end

     0   :  { %s405_s9 = smov [#allocation3]   ;;  %s546_s0 = inlined_call_operand.hbm [shape: s32[16], index: 0, kind: input, shape index: {}]   ;;  %s547_s1 = inlined_call_operand.hbm [shape: f32[64,128], index: 1, kind: input, shape index: {}]   ;;  %s548_s2 = inlined_call_operand.hbm [shape: f32[16,128], index: 2, kind: output, shape index: {}]  }
   0x1   :  { %8 = dma.hbm_to_smem %s546_s0, 16, %s405_s9, [#allocation2] }
   0x2   :  { %379 = dma.done.wait [#allocation2], 16 }
   0x3   :  { %380 = vsyncadd [#allocation2], 4294967280 }
   0x4   :  { %10 = sfence }
   0x5   :  { %11 = vsyncpa [#allocation5], 0 }
   0x6   :  { %12 = vsyncpa [#allocation6], 0 }
   0x7   :  { %14 = vsyncpa [#allocation6 + $0x1], 0  ;;  %s428_s12 = smov 0   ;;  %s430_s13 = smov 0  }
   0x8   :  { %s432_s14 = smov 0   ;;  %s434_s15 = smov 0  }
   0x9 LB: > { %s449_s0 = sadd.s32 4294967295, %s403_s15   ;;  %s239_s16 = sadd.s32 4294967294, %s403_s15   ;;  %s403_s15 = sphi %s434_s15, %s556_s15   ;;  %s399_s14 = sphi %s432_s14, %s555_s14   ;;  %s395_s13 = sphi %s430_s13, %s554_s13   ;;  %s391_s12 = sphi %s428_s12, %s553_s12  }
   0xa   : > { %s453_s17 = sadd.s32 1, %s403_s15   ;;  %s48_s18 = sadd.s32 1, %s399_s14 }
   0xb   : > { %s45_s19 = ssub.s32 %s403_s15, %s453_s17  ;;  %p58_p0 = scmp.ne.s32.totalorder %s399_s14, %s395_s13 }
   0xc   : > { %p46_p1 = scmp.eq.s32.totalorder %s45_s19, 0  ;;  %p59_p2 = scmp.eq.s32.totalorder %s449_s0, 1 }
   0xd   : > { %p64_p3 = scmp.ne.s32.totalorder %s395_s13, %s391_s12  ;;  %p65_p4 = scmp.eq.s32.totalorder %s239_s16, 1 }
   0xe   : > { %s464_s20 = scalar_select %p46_p1, %s399_s14, %s48_s18  }
   0xf   : > { %p466_p5 = por %p59_p2, %p58_p0  ;;  %p470_p6 = por %p65_p4, %p64_p3 }
  0x10   : > { %p240_p7 = scmp.ge.s32.totalorder %s403_s15, 1  ;;  %p72_p8 = scmp.lt.s32.totalorder %s403_s15, 3 }
  0x11   : > { %s550_s22 = scalar_select %p470_p6, 1, 0 }
  0x12   : > { %p264_p9 = scmp.eq.s32.totalorder %s449_s0, 0  ;;  %p477_p10 = pnand %p240_p7, %p72_p8 }
  0x13   : > { %s406_s24 = smov [#allocation4]  }
  0x14   : > { %s84_s25 = sshll.u32 %s406_s24, 4  ;;  %p256_p11 = pneg %p477_p10  ;;  %s85_s25 = int_to_ptr.vmem [resolvable:$true] %s84_s25 }
  0x15   : > { %s322_s26 = scalar_lea.vmem %s85_s25, 1024  ;;  %p330_p3 = scmp.lt.s32.totalorder %s85_s25, %s85_s25 }
  0x16   : > { %p257_p12 = pnand %p264_p9, %p256_p11  ;;  %p323_p0 = scmp.ne.s32.totalorder %s85_s25, %s322_s26 }
  0x17   : > { %p331_p4 = scmp.lt.s32.totalorder %s322_s26, %s322_s26 }
  0x18   : > { %p313_p13 = pneg %p257_p12 }
  0x19   : > { %p332_p6 = por %p331_p4, %p330_p3 }
  0x1a   : > { %p325_p1 = pnand %p323_p0, %p313_p13 }
  0x1c   : > { %p326_p2 = pneg %p325_p1 }
  0x1e   : > { %p333_p7 = pnand %p332_p6, %p326_p2 }
  0x20   : > { %336 = shalt.err (!%p333_p7)
}
  0x21   : > { %s407_s27 = smov 128   ;;  %s408_s28 = smov 8  }
  0x22   : > { %259 = dma.hbm_to_vmem [thread:$0]  (!%p257_p12), %s547_s1, 1024, %s85_s25, [#allocation5], %s407_s27, %s407_s27, %s408_s28  }
  0x23   : > { %100 = sbr.rel (%p477_p10) target bundleno = 82 (0x52), region = 24 }
  0x28   : > { %382 = dma.done.wait (%p264_p9), [#allocation5], 1024  }
  0x29   : > { %384 = vsyncadd (%p264_p9), [#allocation5], 4294966272  ;;  %s112_s3 = sand.u32 1, %s395_s13   ;;  %s245_s4 = sshll.u32 %s449_s0, 3 }
  0x2a   : > { %s244_s5 = sshll.u32 %s112_s3, 3  ;;  %s116_s6 = sld [smem:[#allocation3 + %s245_s4]] }
  0x2b   : > { %s120_s7 = sadd.s32 1, %s245_s4  ;;  %s125_s9 = sadd.s32 2, %s245_s4 }
  0x2c   : > { %s121_s8 = sld [smem:[#allocation3 + %s120_s7]]  ;;  %s130_s11 = sadd.s32 3, %s245_s4 }
  0x2d   : > { %s126_s10 = sld [smem:[#allocation3 + %s125_s9]]  ;;  %s135_s18 = sadd.s32 4, %s245_s4 }
  0x2e   : > { %s131_s16 = sld [smem:[#allocation3 + %s130_s11]]  ;;  %s140_s23 = sadd.s32 5, %s245_s4 }
  0x2f   : > { %s136_s19 = sld [smem:[#allocation3 + %s135_s18]]  ;;  %s145_s26 = sadd.s32 6, %s245_s4 }
  0x30   : > { %s141_s24 = sld [smem:[#allocation3 + %s140_s23]]  ;;  %s117_s25 = scalar_lea.vmem [#allocation4], %s116_s6 }
  0x31   : > { %v118_v0 = vld [vmem:[%s117_s25] sm:$0x1]  ;;  %s150_s27 = sadd.s32 7, %s245_s4  ;;  %s498_s28 = scalar_lea.vmem [#allocation7], %s244_s5 }
  0x32   : > { %119 = vst [vmem:[%s498_s28] sm:$0x1] %v118_v0  ;;  %s146_s29 = sld [smem:[#allocation3 + %s145_s26]]  ;;  %s122_s30 = scalar_lea.vmem [#allocation4], %s121_s8 }
  0x33   : > { %v123_v1 = vld [vmem:[%s122_s30] sm:$0x1]  ;;  %s151_s7 = sld [smem:[#allocation3 + %s150_s27]]  ;;  %s127_s9 = scalar_lea.vmem [#allocation4], %s126_s10 }
  0x34   : > { %124 = vst [vmem:[%s498_s28 + $0x1] sm:$0x1] %v123_v1  ;;  %v128_v2 = vld [vmem:[%s127_s9] sm:$0x1]  ;;  %s132_s4 = scalar_lea.vmem [#allocation4], %s131_s16  ;;  %s247_s11 = sshll.u32 %s449_s0, 7 }
  0x35   : > { %129 = vst [vmem:[%s498_s28 + $0x2] sm:$0x1] %v128_v2  ;;  %v133_v3 = vld [vmem:[%s132_s4] sm:$0x1]  ;;  %s137_s5 = scalar_lea.vmem [#allocation4], %s136_s19  ;;  %s172_s16 = sshll.u32 %s498_s28, 4  ;;  %s173_s16 = int_to_ptr.vmem [resolvable:$true] %s172_s16 }
  0x36   : > { %134 = vst [vmem:[%s498_s28 + $0x3] sm:$0x1] %v133_v3  ;;  %v138_v4 = vld [vmem:[%s137_s5] sm:$0x1]  ;;  %s142_s6 = scalar_lea.vmem [#allocation4], %s141_s24  ;;  %s170_s23 = scalar_lea.hbm %s548_s2, %s247_s11 }
  0x37   : > { %139 = vst [vmem:[%s498_s28 + $0x4] sm:$0x1] %v138_v4  ;;  %v143_v5 = vld [vmem:[%s142_s6] sm:$0x1]  ;;  %s159_s24 = scalar_lea.sflag [#allocation6], %s112_s3  ;;  %s337_s25 = scalar_lea.vmem %s173_s16, 128 }
  0x38   : > { %144 = vst [vmem:[%s498_s28 + $0x5] sm:$0x1] %v143_v5  ;;  %s147_s8 = scalar_lea.vmem [#allocation4], %s146_s29  ;;  %p338_p6 = scmp.ne.s32.totalorder %s173_s16, %s337_s25 }
  0x39   : > { %v148_v6 = vld [vmem:[%s147_s8] sm:$0x1]  ;;  %s152_s10 = scalar_lea.vmem [#allocation4], %s151_s7  ;;  %s409_s26 = smov [#allocation7]  }
  0x3a   : > { %149 = vst [vmem:[%s498_s28 + $0x6] sm:$0x1] %v148_v6  ;;  %v153_v7 = vld [vmem:[%s152_s10] sm:$0x1]  ;;  %p339_p8 = pnand %p338_p6, %p466_p5  ;;  %s341_s27 = sshll.u32 %s409_s26, 4  ;;  %s342_s27 = int_to_ptr.vmem [resolvable:$false] %s341_s27 }
  0x3b   : > { %154 = vst [vmem:[%s498_s28 + $0x7] sm:$0x1] %v153_v7  ;;  %s343_s0 = scalar_lea.vmem %s342_s27, 256  ;;  %p344_p10 = scmp.lt.s32.totalorder %s173_s16, %s342_s27 }
  0x3c   : > { %p340_p9 = pneg %p339_p8  ;;  %p345_p11 = scmp.lt.s32.totalorder %s343_s0, %s337_s25 }
  0x3e   : > { %p346_p12 = por %p345_p11, %p344_p10 }
  0x40   : > { %p347_p13 = pnand %p346_p12, %p340_p9 }
  0x42   : > { %v155_v8 = vld [vmem:[%s498_s28] sm:$0xff] }
  0x43   : > { %v156_v9 = vmul.f32 5.656854, %v155_v8 }
  0x45   : > { %157 = vst [vmem:[%s498_s28] sm:$0xff] %v156_v9 }
  0x46   : > { %350 = shalt.err (!%p347_p13)
}
  0x47   : > { %s351_s29 = scalar_lea.hbm %s170_s23, 128  ;;  %s355_s30 = scalar_lea.hbm %s548_s2, 256 }
  0x48   : > { %p352_p0 = scmp.ne.s32.totalorder %s170_s23, %s351_s29  ;;  %p356_p3 = scmp.lt.s32.totalorder %s170_s23, %s548_s2 }
  0x49   : > { %p357_p4 = scmp.lt.s32.totalorder %s355_s30, %s351_s29 }
  0x4a   : > { %p353_p1 = pnand %p352_p0, %p466_p5 }
  0x4b   : > { %p358_p7 = por %p357_p4, %p356_p3 }
  0x4c   : > { %p354_p2 = pneg %p353_p1 }
  0x4e   : > { %p359_p6 = pnand %p358_p7, %p354_p2 }
  0x50   : > { %362 = shalt.err (!%p359_p6)
}
  0x51   : > { %254 = dma.vmem_to_hbm [thread:$0]  (%p466_p5), %s173_s16, 128, %s170_s23, %s159_s24  }
  0x52 PF: > { %p266_p8 = scmp.ge.s32.totalorder %s403_s15, 2  ;;  %s184_s4 = sand.u32 1, %s391_s12  }
  0x53   : > { %p552_p9 = scmp.ne.s32.totalorder %s550_s22, 0  ;;  %s185_s5 = scalar_lea.sflag [#allocation6], %s184_s4 }
  0x55   : > { %p261_p10 = pnand %p266_p8, %p552_p9 }
  0x57   : > { %p262_p11 = pneg %p261_p10 }
  0x59   : > { %386 = dma.done.wait (%p262_p11), %s185_s5, 128  }
  0x5a   : > { %388 = vsyncadd (%p262_p11), %s185_s5, 4294967168  ;;  %p17_p12 = scmp.ge.s32.totalorder %s453_s17, 4   ;;  %s553_s12 = smov %s395_s13 }
  0x5b   : > { %s554_s13 = smov %s399_s14  ;;  %s555_s14 = smov %s464_s20 }
  0x5c   : > { %s556_s15 = smov %s453_s17  ;;  %19 = sbr.rel (!%p17_p12) target bundleno = 9 (0x9), region = 69 }
  0x61   :  { %190 = vsyncpa [#allocation5], 1 }
  0x62   :  { %192 = vsyncpa [#allocation5 + $0x1], 1 }
  0x63   :  { %193 = vsyncpa [#allocation6], 1 }
  0x64   :  { %195 = vsyncpa [#allocation6 + $0x1], 1 }

</bundles_post_ra>
